<compile_context>
chip_gen: v7x
topology: tpu7x:2x2x1
jax: 0.10.0
libtpu: 0.0.40
codegen_flags: <defaults>
</compile_context>

<pallas_src>
import functools

import jax
import jax.numpy as jnp
from jax.experimental import pallas as pl
from jax.experimental.pallas import tpu as pltpu


def _round_up(a: int, m: int) -> int:
    return ((a + m - 1) // m) * m


def _tpu_generation() -> str:
    try:
        kind = jax.devices()[0].device_kind.lower()
    except Exception:
        kind = ""
    if "v7" in kind:
        return "v7x"
    if "v6" in kind:
        return "v6e"
    if "v5" in kind:
        return "v5e"
    return "default"


# Per-generation: kernel VMEM cap + byte budget for our (double-buffered)
# tiles + token-tile cap + fallback (tm, tn, tk) for the 3-D tiled path.
_GEN_CONFIG = {
    "v5e": dict(vmem_limit=100 << 20, budget=80 << 20, max_tm=1024,
                tiled=(512, 1024, 2048)),
    "v6e": dict(vmem_limit=100 << 20, budget=80 << 20, max_tm=1024,
                tiled=(512, 1024, 2048)),
    "v7x": dict(vmem_limit=56 << 20, budget=44 << 20, max_tm=512,
                tiled=(512, 512, 2048)),
    "default": dict(vmem_limit=64 << 20, budget=48 << 20, max_tm=512,
                    tiled=(256, 512, 1024)),
}
_GEN = _tpu_generation()
_CFG = _GEN_CONFIG[_GEN]


def _resident_kernel(x_ref, w_ref, b_ref, o_ref):
    """Weight-resident, K-collapsed path.

    x_ref: (tm, Dp) input dtype (LHS *and* residual), w_ref: (Dp, Dp) bf16,
    b_ref: (1, Dp) f32, o_ref: (tm, Dp) input dtype.
    """
    x = x_ref[...]
    acc = jnp.dot(x.astype(jnp.bfloat16), w_ref[...],
                  preferred_element_type=jnp.float32)
    o_ref[...] = (acc + b_ref[...] + x.astype(jnp.float32)).astype(o_ref.dtype)


def _tiled_kernel(x_ref, w_ref, b_ref, xres_ref, o_ref, acc_ref):
    """Fallback 3-D tiled path (very large D: full W panel does not fit VMEM).

    x_ref: (tm, tk) input dtype, w_ref: (tk, tn) bf16, b_ref: (1, tn) f32,
    xres_ref: (tm, tn) input dtype, o_ref: (tm, tn), acc_ref: (tm, tn) f32.
    """
    k = pl.program_id(2)

    @pl.when(k == 0)
    def _init():
        # Fold the bias into the accumulator init (no extra epilogue add).
        acc_ref[...] = jnp.broadcast_to(b_ref[...], acc_ref.shape)

    acc_ref[...] += jnp.dot(x_ref[...].astype(jnp.bfloat16), w_ref[...],
                            preferred_element_type=jnp.float32)

    @pl.when(k == pl.num_programs(2) - 1)
    def _finalize():
        o_ref[...] = (acc_ref[...]
                      + xres_ref[...].astype(jnp.float32)).astype(o_ref.dtype)


@jax.jit
def cross_residual(x, y, w, b):
    """Returns (fn(x) + x, y) with fn(x) = x @ w + b, fused in a Pallas kernel.

    x, y: (B, N, D);  w: (D, D) (ideally pre-cast to bf16);  b: (1, D).
    """
    B, N, D = x.shape
    M = B * N
    out_dtype = x.dtype
    x_bytes = jnp.dtype(x.dtype).itemsize
    o_bytes = jnp.dtype(out_dtype).itemsize

    budget = _CFG["budget"]
    Dp = _round_up(D, 128)

    cost = pl.CostEstimate(
        flops=2 * M * D * D,
        transcendentals=0,
        bytes_accessed=M * D * x_bytes + D * D * 2 + D * 4 + M * D * o_bytes,
    )

    x2 = x.reshape(M, D)

    # -------- path selection (trace-time Python on static shapes) --------
    # Weight-resident path: hold the whole (Dp, Dp) bf16 W panel in VMEM with a
    # 1-D grid over token tiles.  Budget 2x for W since the pipeline allocates
    # double buffers even for a grid-invariant block index.
    w_fixed = 2 * (Dp * Dp * 2) + 2 * (Dp * 4)            # W (bf16) + bias
    per_row = 2 * Dp * (x_bytes + o_bytes)                # x tile + out tile
    tm_cap = min(_CFG["max_tm"], _round_up(M, 16))
    resident_tm = 0
    if w_fixed < budget:
        resident_tm = min(tm_cap, ((budget - w_fixed) // per_row) // 16 * 16)

    if resident_tm >= 16:
        tm = int(resident_tm)
        # v7x shards the parallel grid axis over 2 TensorCores: keep >= 2
        # token tiles whenever M allows it.
        if _GEN == "v7x" and _round_up(M, tm) // tm < 2 and tm >= 32:
            tm = max(16, ((tm // 2) // 16) * 16)
        Mp = _round_up(M, tm)

        # Pad only when needed (skip the extra HBM passes on aligned shapes).
        x_p = x2 if (Mp == M and Dp == D) else jnp.pad(
            x2, ((0, Mp - M), (0, Dp - D)))
        w_p = w if Dp == D else jnp.pad(w, ((0, Dp - D), (0, Dp - D)))
        b_p = b if Dp == D else jnp.pad(b, ((0, 0), (0, Dp - D)))
        w_p = w_p.astype(jnp.bfloat16)   # no-op if W was pre-cast at load time
        b_p = b_p.astype(jnp.float32)

        out_p = pl.pallas_call(
            _resident_kernel,
            out_shape=jax.ShapeDtypeStruct((Mp, Dp), out_dtype),
            grid_spec=pltpu.PrefetchScalarGridSpec(
                num_scalar_prefetch=0,
                grid=(Mp // tm,),
                in_specs=[
                    pl.BlockSpec((tm, Dp), lambda i: (i, 0)),  # x: LHS + residual
                    pl.BlockSpec((Dp, Dp), lambda i: (0, 0)),  # W, VMEM-resident
                    pl.BlockSpec((1, Dp), lambda i: (0, 0)),   # bias, resident
                ],
                out_specs=pl.BlockSpec((tm, Dp), lambda i: (i, 0)),
            ),
            compiler_params=pltpu.CompilerParams(
                dimension_semantics=("parallel",),
                vmem_limit_bytes=_CFG["vmem_limit"],
            ),
            cost_estimate=cost,
        )(x_p, w_p, b_p)
    else:
        # Very large D: canonical 3-D tiled matmul with an f32 VMEM accumulator.
        tm0, tn0, tk0 = _CFG["tiled"]
        d128 = _round_up(D, 128)
        tm = min(tm0, _round_up(M, 16))
        tn = min(tn0, d128)
        tk = min(tk0, d128)

        def vmem_use(tm_, tn_, tk_):
            return (2 * tm_ * tk_ * x_bytes      # x (LHS)
                    + 2 * tk_ * tn_ * 2          # W (bf16)
                    + 2 * tm_ * tn_ * x_bytes    # x (residual)
                    + 2 * tm_ * tn_ * o_bytes    # out
                    + tm_ * tn_ * 4              # accumulator scratch
                    + 2 * tn_ * 4)               # bias

        while vmem_use(tm, tn, tk) > budget and tk > 512:
            tk = max(512, tk // 2)
        while vmem_use(tm, tn, tk) > budget and tn > 256:
            tn = max(256, tn // 2)
        while vmem_use(tm, tn, tk) > budget and tm > 16:
            tm = max(16, tm // 2)

        Mp = _round_up(M, tm)
        Kp = _round_up(D, tk)
        Np = _round_up(D, tn)

        x_p = x2 if (Mp == M and Kp == D) else jnp.pad(
            x2, ((0, Mp - M), (0, Kp - D)))
        xr_p = x2 if (Mp == M and Np == D) else jnp.pad(
            x2, ((0, Mp - M), (0, Np - D)))
        w_p = w if (Kp == D and Np == D) else jnp.pad(
            w, ((0, Kp - D), (0, Np - D)))
        b_p = b if Np == D else jnp.pad(b, ((0, 0), (0, Np - D)))
        w_p = w_p.astype(jnp.bfloat16)
        b_p = b_p.astype(jnp.float32)

        out_p = pl.pallas_call(
            _tiled_kernel,
            out_shape=jax.ShapeDtypeStruct((Mp, Np), out_dtype),
            grid_spec=pltpu.PrefetchScalarGridSpec(
                num_scalar_prefetch=0,
                grid=(Mp // tm, Np // tn, Kp // tk),
                in_specs=[
                    pl.BlockSpec((tm, tk), lambda i, j, k: (i, k)),  # x (LHS)
                    pl.BlockSpec((tk, tn), lambda i, j, k: (k, j)),  # W tile
                    pl.BlockSpec((1, tn), lambda i, j, k: (0, j)),   # bias
                    pl.BlockSpec((tm, tn), lambda i, j, k: (i, j)),  # x (residual)
                ],
                out_specs=pl.BlockSpec((tm, tn), lambda i, j, k: (i, j)),
                scratch_shapes=[pltpu.VMEM((tm, tn), jnp.float32)],
            ),
            compiler_params=pltpu.CompilerParams(
                dimension_semantics=("parallel", "parallel", "arbitrary"),
                vmem_limit_bytes=_CFG["vmem_limit"],
            ),
            cost_estimate=cost,
        )(x_p, w_p, b_p, xr_p)

    out = out_p[:M, :D].reshape(B, N, D)
    # y is returned unchanged — no compute, no kernel needed.
    return out, y


def reference(x, y, w, b):
    """Matches kernel numerics: bf16 matmul with f32 accumulation, f32 epilogue."""
    B, N, D = x.shape
    fx = jnp.dot(
        x.reshape(-1, D).astype(jnp.bfloat16),
        w.astype(jnp.bfloat16),
        preferred_element_type=jnp.float32,
    ).reshape(B, N, D)
    return (fx + b.astype(jnp.float32) + x.astype(jnp.float32)).astype(x.dtype), y


if __name__ == "__main__":
    key = jax.random.PRNGKey(0)
    k_x, k_y, k_w, k_b = jax.random.split(key, 4)

    B, N, D = 2, 8, 32
    x = jax.random.normal(k_x, (B, N, D), dtype=jnp.float32)
    y = jax.random.normal(k_y, (B, N, D), dtype=jnp.float32)

    # Parameters of fn (dense projection D -> D).  W is cast to bf16 once at
    # "parameter load" time so the per-call wrapper does no extra cast pass.
    w = jax.random.normal(k_w, (D, D), dtype=jnp.float32) * 0.05
    b = jax.random.normal(k_b, (1, D), dtype=jnp.float32) * 0.01
    w_param = w.astype(jnp.bfloat16)

    out_x, out_y = cross_residual(x, y, w_param, b)
    out_x = jax.block_until_ready(out_x)
    out_y = jax.block_until_ready(out_y)

    ref_x, ref_y = reference(x, y, w, b)
    assert out_x.shape == (B, N, D) and out_y.shape == (B, N, D)
    assert jnp.allclose(out_x, ref_x, atol=1e-3, rtol=1e-3)
    assert jnp.allclose(out_y, ref_y)

    print("KERNEL_OK")
</pallas_src>

<mosaic_0001>
module attributes {stable_mosaic.version = 11 : i64} {
  func.func @_resident_kernel(%arg0: i32, %arg1: memref<16x128xf32, #tpu.memory_space<vmem>>, %arg2: memref<128x128xbf16, #tpu.memory_space<vmem>>, %arg3: memref<1x128xf32, #tpu.memory_space<vmem>>, %arg4: memref<16x128xf32, #tpu.memory_space<vmem>>) attributes {dimension_semantics = [#tpu.dimension_semantics<parallel>], iteration_bounds = array<i64: 1>, scalar_prefetch = 0 : i64, scratch_operands = 0 : i64, tpu.core_type = #tpu.core_type<tc>, window_params = [{transform_indices = @transform_0, window_bounds = array<i64: 16, 128>}, {pipeline_mode = #tpu.pipeline_mode<synchronous>, transform_indices = @transform_1, window_bounds = array<i64: 128, 128>}, {pipeline_mode = #tpu.pipeline_mode<synchronous>, transform_indices = @transform_2, window_bounds = array<i64: 1, 128>}, {transform_indices = @transform_3, window_bounds = array<i64: 16, 128>}]} {
    %c0 = arith.constant 0 : index
    %c0_0 = arith.constant 0 : index
    %0 = vector.load %arg1[%c0, %c0_0] : memref<16x128xf32, #tpu.memory_space<vmem>>, vector<16x128xf32>
    %1 = arith.truncf %0 : vector<16x128xf32> to vector<16x128xbf16>
    %c0_1 = arith.constant 0 : index
    %c0_2 = arith.constant 0 : index
    %2 = vector.load %arg2[%c0_1, %c0_2] : memref<128x128xbf16, #tpu.memory_space<vmem>>, vector<128x128xbf16>
    %cst = arith.constant dense<0.000000e+00> : vector<16x128xf32>
    %3 = tpu.matmul %1, %2, %cst {dimension_numbers = #tpu.dot_dimension_numbers<[1], [0], [0], [1], [0, 0, 1, 1], [], []>} : vector<16x128xbf16>, vector<128x128xbf16>, vector<16x128xf32> -> vector<16x128xf32>
    %c0_3 = arith.constant 0 : index
    %c0_4 = arith.constant 0 : index
    %4 = vector.load %arg3[%c0_3, %c0_4] : memref<1x128xf32, #tpu.memory_space<vmem>>, vector<1x128xf32>
    %5 = vector.broadcast %4 : vector<1x128xf32> to vector<16x128xf32>
    %6 = arith.addf %3, %5 : vector<16x128xf32>
    %7 = arith.addf %6, %0 : vector<16x128xf32>
    %c0_5 = arith.constant 0 : index
    %c0_6 = arith.constant 0 : index
    %8 = vector.load %arg4[%c0_5, %c0_6] : memref<16x128xf32, #tpu.memory_space<vmem>>, vector<16x128xf32>
    tpu.vector_store %arg4[%c0_5, %c0_6], %7 {strides = array<i32>} : memref<16x128xf32, #tpu.memory_space<vmem>>, vector<16x128xf32>,
    return
  }
  func.func @transform_0(%arg0: i32) -> (i32, i32) {
    %c0_i32 = arith.constant 0 : i32
    %c0_i32_0 = arith.constant 0 : i32
    return %arg0, %c0_i32 : i32, i32
  }
  func.func @transform_1(%arg0: i32) -> (i32, i32) {
    %c0_i32 = arith.constant 0 : i32
    %c0_i32_0 = arith.constant 0 : i32
    %c0_i32_1 = arith.constant 0 : i32
    return %c0_i32, %c0_i32_0 : i32, i32
  }
  func.func @transform_2(%arg0: i32) -> (i32, i32) {
    %c0_i32 = arith.constant 0 : i32
    %c0_i32_0 = arith.constant 0 : i32
    %c0_i32_1 = arith.constant 0 : i32
    return %c0_i32, %c0_i32_0 : i32, i32
  }
  func.func @transform_3(%arg0: i32) -> (i32, i32) {
    %c0_i32 = arith.constant 0 : i32
    %c0_i32_0 = arith.constant 0 : i32
    return %arg0, %c0_i32 : i32, i32
  }
}

</mosaic_0001>

<bundles_post_ra>
// kernel: cross_residual.1
= control target key start
LH: loop header
LB: loop body
LE: loop exit
PB: predicated region body
PF: predicated region fallthrough
CT: control target
= control target key end

     0   :  { %8 = vsyncpa [#allocation3], 0  ;;  %s426_s0 = inlined_call_operand.hbm [shape: f32[16,128], index: 0, kind: input, shape index: {}]   ;;  %s427_s1 = inlined_call_operand.hbm [shape: bf16[128,128], index: 1, kind: input, shape index: {}]   ;;  %s428_s2 = inlined_call_operand.hbm [shape: f32[1,128], index: 2, kind: input, shape index: {}]   ;;  %s429_s3 = inlined_call_operand.hbm [shape: f32[16,128], index: 3, kind: output, shape index: {}]  }
   0x1   :  { %9 = vsyncpa [#allocation6], 0 }
   0x2   :  { %10 = vsyncpa [#allocation4], 0  ;;  %s342_s12 = smov [#allocation5]   ;;  %s248_s16 = scalar_lea.hbm %s427_s1, 1024 }
   0x3   :  { %s28_s13 = sshll.u32 %s342_s12, 4  ;;  %p249_p0 = scmp.ne.s32.totalorder %s427_s1, %s248_s16  ;;  %s29_s13 = int_to_ptr.vmem [resolvable:$true] %s28_s13 }
   0x4   :  { %p252_p1 = scmp.lt.u32.totalorder %s248_s16, %s427_s1 }
   0x6   :  { %p254_p2 = pnand %p252_p1, %p249_p0 }
   0x8   :  { %257 = shalt.err (!%p254_p2)
}
   0x9   :  { %s258_s21 = scalar_lea.vmem %s29_s13, 1024  ;;  %p263_p4 = scmp.lt.s32.totalorder %s29_s13, %s29_s13 }
   0xa   :  { %p259_p3 = scmp.ne.s32.totalorder %s29_s13, %s258_s21  ;;  %p264_p5 = scmp.lt.s32.totalorder %s258_s21, %s258_s21 }
   0xc   :  { %p265_p6 = por %p264_p5, %p263_p4 }
   0xe   :  { %p266_p7 = pnand %p265_p6, %p259_p3 }
  0x10   :  { %269 = shalt.err (!%p266_p7)
}
  0x11   :  { %s343_s22 = smov 64   ;;  %s344_s23 = smov 4  }
  0x12   :  { %34 = dma.hbm_to_vmem [thread:$0]  %s427_s1, 1024, %s29_s13, [#allocation6], %s343_s22, %s343_s22, %s344_s23  }
  0x13   :  { %s345_s26 = smov [#allocation2]   ;;  %s270_s30 = scalar_lea.hbm %s426_s0, 256 }
  0x14   :  { %s16_s27 = sshll.u32 %s345_s26, 4  ;;  %p271_p8 = scmp.ne.s32.totalorder %s426_s0, %s270_s30  ;;  %s17_s27 = int_to_ptr.vmem [resolvable:$true] %s16_s27 }
  0x15   :  { %p274_p9 = scmp.lt.u32.totalorder %s270_s30, %s426_s0 }
  0x17   :  { %p276_p10 = pnand %p274_p9, %p271_p8 }
  0x19   :  { %279 = shalt.err (!%p276_p10)
}
  0x1a   :  { %s280_s8 = scalar_lea.vmem %s17_s27, 256  ;;  %p285_p12 = scmp.lt.s32.totalorder %s17_s27, %s17_s27 }
  0x1b   :  { %p281_p11 = scmp.ne.s32.totalorder %s17_s27, %s280_s8  ;;  %p286_p13 = scmp.lt.s32.totalorder %s280_s8, %s280_s8 }
  0x1d   :  { %p287_p0 = por %p286_p13, %p285_p12 }
  0x1f   :  { %p288_p1 = pnand %p287_p0, %p281_p11 }
  0x21   :  { %291 = shalt.err (!%p288_p1)
}
  0x22   :  { %s346_s1 = smov 128   ;;  %s347_s9 = smov 8  }
  0x23   :  { %22 = dma.hbm_to_vmem [thread:$0]  %s426_s0, 256, %s17_s27, [#allocation3], %s346_s1, %s346_s1, %s347_s9  }
  0x24   :  { %s348_s12 = smov [#allocation7]   ;;  %s292_s16 = scalar_lea.hbm %s428_s2, 16 }
  0x25   :  { %s41_s13 = sshll.u32 %s348_s12, 4  ;;  %p293_p2 = scmp.ne.s32.totalorder %s428_s2, %s292_s16  ;;  %s42_s13 = int_to_ptr.vmem [resolvable:$true] %s41_s13 }
  0x26   :  { %p296_p3 = scmp.lt.u32.totalorder %s292_s16, %s428_s2 }
  0x28   :  { %p298_p4 = pnand %p296_p3, %p293_p2 }
  0x2a   :  { %301 = shalt.err (!%p298_p4)
}
  0x2b   :  { %s302_s21 = scalar_lea.vmem %s42_s13, 16  ;;  %s306_s0 = scalar_lea.vmem %s42_s13, 32 }
  0x2c   :  { %p303_p5 = scmp.ne.s32.totalorder %s42_s13, %s302_s21  ;;  %p307_p6 = scmp.lt.s32.totalorder %s42_s13, %s42_s13 }
  0x2d   :  { %p308_p7 = scmp.lt.s32.totalorder %s306_s0, %s302_s21 }
  0x2f   :  { %p309_p8 = por %p308_p7, %p307_p6 }
  0x31   :  { %p310_p9 = pnand %p309_p8, %p303_p5 }
  0x33   :  { %313 = shalt.err (!%p310_p9)
}
  0x34   :  { %44 = dma.hbm_to_vmem [thread:$0]  %s428_s2, 16, %s42_s13, [#allocation6]  }
  0x35   :  { %336 = dma.done.wait [#allocation3], 256  }
  0x36   :  { %337 = vsyncadd [#allocation3], 4294967040 }
  0x37   :  { %338 = dma.done.wait [#allocation6], 1040  }
  0x38   :  { %339 = vsyncadd [#allocation6], 4294966256  ;;  %v349_v0 = vmov 0.0   ;;  %vm350_vm0 = vmmov 0   ;;  %v240_v1 = vld [vmem:[#allocation5] sm:$0xff]   ;;  %v241_v2 = vld [vmem:[#allocation5 + $0x8] sm:$0xff]  }
  0x39   :  { %210 = vmatprep.subr.bf16.mxu0 %v349_v0  ;;  %226 = vmatprep.mubr.msk.bf16.mxu0 %vm350_vm0, %v349_v0  ;;  %v242_v3 = vld [vmem:[#allocation5 + $0x10] sm:$0xff]   ;;  %v243_v4 = vld [vmem:[#allocation5 + $0x18] sm:$0xff]   ;;  %v244_v5 = vld [vmem:[#allocation5 + $0x20] sm:$0xff]   ;;  %s351_s2 = smov [#allocation8]  }
  0x3a   :  { %211 = vmatpush3.bf16.msra.mxu0 %v240_v1  ;;  %v245_v6 = vld [vmem:[#allocation5 + $0x28] sm:$0xff]   ;;  %v246_v7 = vld [vmem:[#allocation5 + $0x30] sm:$0xff]   ;;  %v247_v8 = vld [vmem:[#allocation5 + $0x38] sm:$0xff]   ;;  %s179_s24 = sshll.u32 %s351_s2, 4  ;;  %s180_s24 = int_to_ptr.vmem [resolvable:$true] %s179_s24 }
  0x3b   :  { %212 = vmatprep.subr.bf16.mxu0 %v349_v0  ;;  %v55_v9 = vld [vmem:[#allocation2] sm:$0xff]  ;;  %v56_v10 = vld [vmem:[#allocation2 + $0x8] sm:$0xff]  ;;  %v192_v12 = vld [vmem:[#allocation7] ss:$0 sm:$0xff]  ;;  %s314_s25 = scalar_lea.vmem %s180_s24, 256  ;;  %p319_p11 = scmp.lt.s32.totalorder %s180_s24, %s180_s24 }
  0x3c   :  { %v57_v11 = vpack.c.bf16 %v56_v10, %v55_v9  ;;  %p315_p10 = scmp.ne.s32.totalorder %s180_s24, %s314_s25  ;;  %p320_p12 = scmp.lt.s32.totalorder %s314_s25, %s314_s25 }
  0x3e   :  { %213 = vmatpush3.bf16.msra.mxu0 %v241_v2  ;;  %p321_p13 = por %p320_p12, %p319_p11 }
  0x3f   :  { %214 = vmatprep.subr.bf16.mxu0 %v349_v0 }
  0x40   :  { %p322_p0 = pnand %p321_p13, %p315_p10 }
  0x42   :  { %215 = vmatpush3.bf16.msra.mxu0 %v242_v3 }
  0x43   :  { %216 = vmatprep.subr.bf16.mxu0 %v349_v0 }
  0x46   :  { %217 = vmatpush3.bf16.msra.mxu0 %v243_v4 }
  0x47   :  { %218 = vmatprep.subr.bf16.mxu0 %v349_v0 }
  0x4a   :  { %219 = vmatpush3.bf16.msra.mxu0 %v244_v5 }
  0x4b   :  { %220 = vmatprep.subr.bf16.mxu0 %v349_v0 }
  0x4e   :  { %221 = vmatpush3.bf16.msra.mxu0 %v245_v6 }
  0x4f   :  { %222 = vmatprep.subr.bf16.mxu0 %v349_v0 }
  0x52   :  { %223 = vmatpush3.bf16.msra.mxu0 %v246_v7 }
  0x53   :  { %224 = vmatprep.subr.bf16.mxu0 %v349_v0 }
  0x56   :  { %225 = vmatpush3.bf16.msra.mxu0 %v247_v8 }
  0x59   :  { %227 = vmatmul.mubr.bf16.vlgmr.msra.gmra.mrb[0].mxu0 %v57_v11 }
 0x12c   :  { %v163_v13 = vpop.f32.mrb[0].mxu0 }
 0x12d   :  { %v164_v14 = vadd.f32 %v192_v12, %v163_v13  ;;  %v228_v15 = vpop.f32.mrb[1].mxu0 }
 0x12e   :  { %v166_v16 = vpop.f32.mrb[2].mxu0 }
 0x12f   :  { %v170_v17 = vadd.f32 %v164_v14, %v55_v9  ;;  %v167_v18 = vadd.f32 %v192_v12, %v166_v16  ;;  %v229_v19 = vpop.f32.mrb[3].mxu0 }
 0x131   :  { %172 = vst [vmem:[#allocation8] sm:$0xff] %v170_v17  ;;  %v171_v20 = vadd.f32 %v167_v18, %v56_v10 }
 0x133   :  { %173 = vst [vmem:[#allocation8 + $0x8] sm:$0xff] %v171_v20 }
 0x134   :  { %325 = shalt.err (!%p322_p0)
}
 0x135   :  { %s326_s28 = scalar_lea.hbm %s429_s3, 256 }
 0x136   :  { %p327_p1 = scmp.ne.s32.totalorder %s429_s3, %s326_s28  ;;  %p330_p2 = scmp.lt.u32.totalorder %s326_s28, %s429_s3 }
 0x138   :  { %p332_p3 = pnand %p330_p2, %p327_p1 }
 0x13a   :  { %335 = shalt.err (!%p332_p3)
}
 0x13b   :  { %185 = dma.vmem_to_hbm [thread:$0]  %s180_s24, 256, %s429_s3, [#allocation4], %s346_s1, %s346_s1, %s347_s9  }
 0x13c   :  { %340 = dma.done.wait [#allocation4], 256  }
 0x13d   :  { %341 = vsyncadd [#allocation4], 4294967040 }
 0x13e   :  { %189 = vsyncpa [#allocation3], 1 }
 0x13f   :  { %190 = vsyncpa [#allocation6], 1 }
 0x140   :  { %191 = vsyncpa [#allocation4], 1 }

</bundles_post_ra>
